<compile_context>
chip_gen: v7x
topology: tpu7x:2x2x1
jax: 0.10.0
libtpu: 0.0.40
codegen_flags: <defaults>
</compile_context>

<pallas_src>
import jax
import jax.numpy as jnp
from jax.experimental import pallas as pl
from jax.experimental.pallas import tpu as pltpu


def se_kernel(x_ref, xse_ref, w1_ref, b1_ref, w2_ref, b2_ref, out_ref):
    # x_ref / xse_ref / out_ref : (C, T)  -- channels on sublanes, spatial on lanes
    # w1_ref / w2_ref           : (C, C)  -- (C_out, C_in), PyTorch order
    # b1_ref / b2_ref           : (C, 1)  -- f32
    # conv_reduce (1x1 conv == channel matmul); MXU inputs in the weight dtype
    # (bf16 by default), accumulation in f32.
    xse = xse_ref[...].astype(w1_ref.dtype)
    h = jnp.dot(w1_ref[...], xse, preferred_element_type=jnp.float32)
    h = jnp.maximum(h + b1_ref[...], 0.0)

    # conv_expand + bias.
    g = jnp.dot(w2_ref[...], h.astype(w2_ref.dtype),
                preferred_element_type=jnp.float32)
    g = g + b2_ref[...]

    # Sigmoid gate as exp (EUP) + approximate reciprocal (EUP) instead of a
    # VALU divide; this epilogue is the only per-tile VPU work.
    gate = pl.reciprocal(1.0 + jnp.exp(-g), approx=True)

    out_ref[...] = (x_ref[...].astype(jnp.float32) * gate).astype(out_ref.dtype)


def _vmem_capacity_bytes():
    # Trace-time hardware query; fall back to the smallest production VMEM
    # (v7x: 64 MiB) so the tile choice is safe on any generation.
    try:
        return int(pltpu.get_tpu_info().vmem_capacity_bytes)
    except Exception:
        return 64 * 1024 * 1024


def _working_set_bytes(C, T, act_isz, w_isz, out_isz):
    # Double-buffered streaming tiles + resident weights + f32 temporaries.
    tiles = 2 * 2 * C * T * act_isz             # x, x_se (2 bufs each)
    tiles += 2 * C * T * out_isz                # out (2 bufs)
    weights = 2 * 2 * (C * C * w_isz + C * 4)   # w1/b1, w2/b2 (2 bufs each)
    temps = 3 * C * T * 4                       # h / g / gate f32 intermediates
    return tiles + weights + temps


def _pick_tile(N, C, HW, act_isz, w_isz, out_isz, tile_cols, vmem_budget):
    if HW <= tile_cols:
        T = HW                                   # one full-row, lane-dense tile
    else:
        T = max(128, (tile_cols // 128) * 128)   # multiple of 128 lanes
    # Shrink until the double-buffered working set fits the VMEM budget.
    while T > 128 and _working_set_bytes(C, T, act_isz, w_isz, out_isz) > vmem_budget:
        T = max(128, ((T // 2) // 128) * 128)
    # Keep >= ~8 grid steps when the spatial extent allows it, so both v7x
    # TensorCores get work and per-step DMA stays overlapped.
    while T > 512 and N * pl.cdiv(HW, T) < 8:
        T = max(512, ((T // 2) // 128) * 128)
    return T


def _se_layer_xla(x, x_se, w1m, b1m, w2m, b2m):
    # Plain-XLA fallback for shapes where the (C, T) Pallas layout would be
    # lane-sparse (H*W < 128) or sublane-sparse (tiny channel counts).
    h = jnp.einsum("nchw,oc->nohw", x_se.astype(jnp.float32),
                   w1m.astype(jnp.float32))
    h = jnp.maximum(h + b1m.reshape(1, -1, 1, 1), 0.0)
    g = jnp.einsum("nchw,oc->nohw", h, w2m.astype(jnp.float32))
    g = g + b2m.reshape(1, -1, 1, 1)
    return (x.astype(jnp.float32) * jax.nn.sigmoid(g)).astype(x.dtype)


def se_layer(x, x_se, w1, b1, w2, b2, *, tile_cols=4096, mxu_dtype=jnp.bfloat16):
    """SELayer forward.  x, x_se: NCHW.  w1, w2: (C, C, 1, 1).  b1, b2: (C,).

    tile_cols : requested spatial tile width (lane dim); clamped/shrunk to a
                generation-aware VMEM budget.
    mxu_dtype : dtype the two channel matmuls run in on the MXU (accumulation
                is always f32).  bf16 by default (recommended); pass
                jnp.float32 for bit-accurate f32 math.
    """
    N, C, H, W = x.shape
    assert x_se.shape == x.shape
    HW = H * W

    # Conv weights (C_out, C_in, 1, 1) -> (C_out, C_in); biases kept in f32.
    w1m = w1.reshape(C, C).astype(mxu_dtype)
    w2m = w2.reshape(C, C).astype(mxu_dtype)
    b1m = b1.reshape(C, 1).astype(jnp.float32)
    b2m = b2.reshape(C, 1).astype(jnp.float32)

    act_isz = jnp.dtype(x.dtype).itemsize
    w_isz = jnp.dtype(mxu_dtype).itemsize
    min_sublanes = 8 if act_isz >= 4 else 16
    if HW < 128 or C < min_sublanes:
        # Lane-/sublane-sparse shape: masked partial stores and mostly-padding
        # vregs/MXU rows make Pallas a loss here; use XLA instead.
        return _se_layer_xla(x, x_se, w1m, b1m, w2m, b2m)

    # Free reshapes: NCHW -> (N, C, H*W).  No transposes, no padding.
    xf = x.reshape(N, C, HW)
    sf = x_se.reshape(N, C, HW)

    vmem_cap = _vmem_capacity_bytes()
    T = _pick_tile(N, C, HW, act_isz, w_isz, act_isz, tile_cols,
                   vmem_budget=int(0.40 * vmem_cap))
    ws = _working_set_bytes(C, T, act_isz, w_isz, act_isz)
    vmem_limit = min(int(0.75 * vmem_cap), max(ws + (8 << 20), 32 << 20))

    grid = (N, pl.cdiv(HW, T))

    cost = pl.CostEstimate(
        flops=4 * N * C * C * HW,                               # two CxC matmuls
        transcendentals=N * C * HW,                             # exp in the gate
        bytes_accessed=3 * N * C * HW * act_isz + 2 * C * C * w_isz,
    )

    out_flat = pl.pallas_call(
        se_kernel,
        out_shape=jax.ShapeDtypeStruct((N, C, HW), x.dtype),
        grid_spec=pltpu.PrefetchScalarGridSpec(
            num_scalar_prefetch=0,
            grid=grid,
            in_specs=[
                pl.BlockSpec((None, C, T), lambda n, j: (n, 0, j)),  # x tile
                pl.BlockSpec((None, C, T), lambda n, j: (n, 0, j)),  # x_se tile
                pl.BlockSpec((C, C), lambda n, j: (0, 0)),           # w1 (resident)
                pl.BlockSpec((C, 1), lambda n, j: (0, 0)),           # b1 (resident)
                pl.BlockSpec((C, C), lambda n, j: (0, 0)),           # w2 (resident)
                pl.BlockSpec((C, 1), lambda n, j: (0, 0)),           # b2 (resident)
            ],
            out_specs=pl.BlockSpec((None, C, T), lambda n, j: (n, 0, j)),
        ),
        compiler_params=pltpu.CompilerParams(
            dimension_semantics=("parallel", "parallel"),
            vmem_limit_bytes=vmem_limit),
        cost_estimate=cost,
    )(xf, sf, w1m, b1m, w2m, b2m)

    # Free reshape back: (N, C, H*W) -> NCHW.
    return out_flat.reshape(N, C, H, W)


def _reference(x, x_se, w1, b1, w2, b2):
    # Pure-JAX (f32) reference of the PyTorch forward: 1x1 convs as einsums.
    C = w1.shape[0]
    h = jnp.einsum("nchw,oc->nohw", x_se, w1.reshape(C, C))
    h = jnp.maximum(h + b1[None, :, None, None], 0.0)
    g = jnp.einsum("nchw,oc->nohw", h, w2.reshape(C, C))
    g = g + b2[None, :, None, None]
    return x * jax.nn.sigmoid(g)


def _run_case(key, N, C, H, W, dtype, tile_cols, mxu_dtype, atol, rtol):
    k1, k2, k3, k4, k5, k6 = jax.random.split(key, 6)
    x = jax.random.normal(k1, (N, C, H, W), dtype=jnp.float32)
    x_se = jax.random.normal(k2, (N, C, H, W), dtype=jnp.float32)
    # Parameters per nn.Conv2d(C, C, 1, bias=True).
    w1 = jax.random.normal(k3, (C, C, 1, 1), dtype=jnp.float32) * 0.1
    b1 = jax.random.normal(k4, (C,), dtype=jnp.float32) * 0.1
    w2 = jax.random.normal(k5, (C, C, 1, 1), dtype=jnp.float32) * 0.1
    b2 = jax.random.normal(k6, (C,), dtype=jnp.float32) * 0.1

    x_in = x.astype(dtype)
    xse_in = x_se.astype(dtype)

    out = se_layer(x_in, xse_in, w1, b1, w2, b2,
                   tile_cols=tile_cols, mxu_dtype=mxu_dtype)
    out = jax.block_until_ready(out)
    assert out.shape == (N, C, H, W)
    assert out.dtype == dtype

    # f32 reference on exactly the (possibly bf16-rounded) inputs the kernel saw.
    ref = _reference(x_in.astype(jnp.float32), xse_in.astype(jnp.float32),
                     w1, b1, w2, b2)
    err = float(jnp.max(jnp.abs(out.astype(jnp.float32) - ref)))
    assert jnp.allclose(out.astype(jnp.float32), ref, atol=atol, rtol=rtol), err


if __name__ == "__main__":
    key = jax.random.PRNGKey(0)
    k_a, k_b, k_c = jax.random.split(key, 3)

    # f32 activations, f32 MXU path, single full-H*W tile per batch element.
    # Tolerance absorbs only the EUP approximate reciprocal in the gate.
    _run_case(k_a, N=2, C=32, H=16, W=16, dtype=jnp.float32,
              tile_cols=4096, mxu_dtype=jnp.float32, atol=5e-3, rtol=5e-3)

    # f32 activations, forced multi-tile spatial grid (exercises lane tiling).
    _run_case(k_b, N=2, C=32, H=16, W=16, dtype=jnp.float32,
              tile_cols=128, mxu_dtype=jnp.float32, atol=5e-3, rtol=5e-3)

    # Recommended production path: bf16 streaming + bf16 MXU (f32 accumulation).
    _run_case(k_c, N=2, C=32, H=16, W=16, dtype=jnp.bfloat16,
              tile_cols=4096, mxu_dtype=jnp.bfloat16, atol=5e-2, rtol=5e-2)

    print("KERNEL_OK")
</pallas_src>

<mosaic_0001>
module attributes {stable_mosaic.version = 11 : i64} {
  func.func @se_kernel(%arg0: i32, %arg1: i32, %arg2: memref<1x32x256xf32, #tpu.memory_space<vmem>>, %arg3: memref<1x32x256xf32, #tpu.memory_space<vmem>>, %arg4: memref<32x32xf32, #tpu.memory_space<vmem>>, %arg5: memref<32x1xf32, #tpu.memory_space<vmem>>, %arg6: memref<32x32xf32, #tpu.memory_space<vmem>>, %arg7: memref<32x1xf32, #tpu.memory_space<vmem>>, %arg8: memref<1x32x256xf32, #tpu.memory_space<vmem>>) attributes {dimension_semantics = [#tpu.dimension_semantics<parallel>, #tpu.dimension_semantics<parallel>], iteration_bounds = array<i64: 2, 1>, scalar_prefetch = 0 : i64, scratch_operands = 0 : i64, tpu.core_type = #tpu.core_type<tc>, window_params = [{transform_indices = @transform_0, window_bounds = array<i64: 1, 32, 256>}, {transform_indices = @transform_1, window_bounds = array<i64: 1, 32, 256>}, {pipeline_mode = #tpu.pipeline_mode<synchronous>, transform_indices = @transform_2, window_bounds = array<i64: 32, 32>}, {pipeline_mode = #tpu.pipeline_mode<synchronous>, transform_indices = @transform_3, window_bounds = array<i64: 32, 1>}, {pipeline_mode = #tpu.pipeline_mode<synchronous>, transform_indices = @transform_4, window_bounds = array<i64: 32, 32>}, {pipeline_mode = #tpu.pipeline_mode<synchronous>, transform_indices = @transform_5, window_bounds = array<i64: 32, 1>}, {transform_indices = @transform_6, window_bounds = array<i64: 1, 32, 256>}]} {
    %c0 = arith.constant 0 : index
    %c0_0 = arith.constant 0 : index
    %c0_1 = arith.constant 0 : index
    %0 = vector.load %arg3[%c0, %c0_0, %c0_1] : memref<1x32x256xf32, #tpu.memory_space<vmem>>, vector<1x32x256xf32>
    %1 = vector.shape_cast %0 : vector<1x32x256xf32> to vector<32x256xf32>
    %c0_2 = arith.constant 0 : index
    %c0_3 = arith.constant 0 : index
    %2 = vector.load %arg4[%c0_2, %c0_3] : memref<32x32xf32, #tpu.memory_space<vmem>>, vector<32x32xf32>
    %cst = arith.constant dense<0.000000e+00> : vector<32x256xf32>
    %3 = tpu.matmul %2, %1, %cst {dimension_numbers = #tpu.dot_dimension_numbers<[1], [0], [0], [1], [0, 0, 1, 1], [], []>} : vector<32x32xf32>, vector<32x256xf32>, vector<32x256xf32> -> vector<32x256xf32>
    %c0_4 = arith.constant 0 : index
    %c0_5 = arith.constant 0 : index
    %4 = vector.load %arg5[%c0_4, %c0_5] : memref<32x1xf32, #tpu.memory_space<vmem>>, vector<32x1xf32>
    %5 = vector.broadcast %4 : vector<32x1xf32> to vector<32x256xf32>
    %6 = arith.addf %3, %5 : vector<32x256xf32>
    %cst_6 = arith.constant 0.000000e+00 : f32
    %7 = vector.broadcast %cst_6 : f32 to vector<32x256xf32>
    %8 = arith.maximumf %6, %7 : vector<32x256xf32>
    %c0_7 = arith.constant 0 : index
    %c0_8 = arith.constant 0 : index
    %9 = vector.load %arg6[%c0_7, %c0_8] : memref<32x32xf32, #tpu.memory_space<vmem>>, vector<32x32xf32>
    %cst_9 = arith.constant dense<0.000000e+00> : vector<32x256xf32>
    %10 = tpu.matmul %9, %8, %cst_9 {dimension_numbers = #tpu.dot_dimension_numbers<[1], [0], [0], [1], [0, 0, 1, 1], [], []>} : vector<32x32xf32>, vector<32x256xf32>, vector<32x256xf32> -> vector<32x256xf32>
    %c0_10 = arith.constant 0 : index
    %c0_11 = arith.constant 0 : index
    %11 = vector.load %arg7[%c0_10, %c0_11] : memref<32x1xf32, #tpu.memory_space<vmem>>, vector<32x1xf32>
    %12 = vector.broadcast %11 : vector<32x1xf32> to vector<32x256xf32>
    %13 = arith.addf %10, %12 : vector<32x256xf32>
    %cst_12 = arith.constant 0.000000e+00 : f32
    %14 = vector.broadcast %cst_12 : f32 to vector<32x256xf32>
    %15 = arith.subf %14, %13 : vector<32x256xf32>
    %16 = math.exp %15 : vector<32x256xf32>
    %cst_13 = arith.constant 1.000000e+00 : f32
    %17 = vector.broadcast %cst_13 : f32 to vector<32x256xf32>
    %18 = arith.addf %17, %16 : vector<32x256xf32>
    %19 = tpu.reciprocal %18 {approx = true} : vector<32x256xf32> -> vector<32x256xf32>
    %c0_14 = arith.constant 0 : index
    %c0_15 = arith.constant 0 : index
    %c0_16 = arith.constant 0 : index
    %20 = vector.load %arg2[%c0_14, %c0_15, %c0_16] : memref<1x32x256xf32, #tpu.memory_space<vmem>>, vector<1x32x256xf32>
    %21 = vector.shape_cast %20 : vector<1x32x256xf32> to vector<32x256xf32>
    %22 = arith.mulf %21, %19 : vector<32x256xf32>
    %c0_17 = arith.constant 0 : index
    %c0_18 = arith.constant 0 : index
    %c0_19 = arith.constant 0 : index
    %23 = vector.load %arg8[%c0_17, %c0_18, %c0_19] : memref<1x32x256xf32, #tpu.memory_space<vmem>>, vector<1x32x256xf32>
    %24 = vector.shape_cast %23 : vector<1x32x256xf32> to vector<32x256xf32>
    %25 = vector.shape_cast %22 : vector<32x256xf32> to vector<1x32x256xf32>
    tpu.vector_store %arg8[%c0_17, %c0_18, %c0_19], %25 {strides = array<i32>} : memref<1x32x256xf32, #tpu.memory_space<vmem>>, vector<1x32x256xf32>,
    return
  }
  func.func @transform_0(%arg0: i32, %arg1: i32) -> (i32, i32, i32) {
    %c0_i32 = arith.constant 0 : i32
    %c0_i32_0 = arith.constant 0 : i32
    return %arg0, %c0_i32, %arg1 : i32, i32, i32
  }
  func.func @transform_1(%arg0: i32, %arg1: i32) -> (i32, i32, i32) {
    %c0_i32 = arith.constant 0 : i32
    %c0_i32_0 = arith.constant 0 : i32
    return %arg0, %c0_i32, %arg1 : i32, i32, i32
  }
  func.func @transform_2(%arg0: i32, %arg1: i32) -> (i32, i32) {
    %c0_i32 = arith.constant 0 : i32
    %c0_i32_0 = arith.constant 0 : i32
    %c0_i32_1 = arith.constant 0 : i32
    return %c0_i32, %c0_i32_0 : i32, i32
  }
  func.func @transform_3(%arg0: i32, %arg1: i32) -> (i32, i32) {
    %c0_i32 = arith.constant 0 : i32
    %c0_i32_0 = arith.constant 0 : i32
    %c0_i32_1 = arith.constant 0 : i32
    return %c0_i32, %c0_i32_0 : i32, i32
  }
  func.func @transform_4(%arg0: i32, %arg1: i32) -> (i32, i32) {
    %c0_i32 = arith.constant 0 : i32
    %c0_i32_0 = arith.constant 0 : i32
    %c0_i32_1 = arith.constant 0 : i32
    return %c0_i32, %c0_i32_0 : i32, i32
  }
  func.func @transform_5(%arg0: i32, %arg1: i32) -> (i32, i32) {
    %c0_i32 = arith.constant 0 : i32
    %c0_i32_0 = arith.constant 0 : i32
    %c0_i32_1 = arith.constant 0 : i32
    return %c0_i32, %c0_i32_0 : i32, i32
  }
  func.func @transform_6(%arg0: i32, %arg1: i32) -> (i32, i32, i32) {
    %c0_i32 = arith.constant 0 : i32
    %c0_i32_0 = arith.constant 0 : i32
    return %arg0, %c0_i32, %arg1 : i32, i32, i32
  }
}

</mosaic_0001>

<bundles_post_ra>
// kernel: tpu_custom_call.1
= control target key start
LH: loop header
LB: loop body
LE: loop exit
PB: predicated region body
PF: predicated region fallthrough
CT: control target
= control target key end

     0   :  { %s1474_s0 = inlined_call_operand.hbm [shape: f32[2,32,256], index: 0, kind: input, shape index: {}]   ;;  %s1475_s1 = inlined_call_operand.hbm [shape: f32[2,32,256], index: 1, kind: input, shape index: {}]   ;;  %s1476_s2 = inlined_call_operand.vmem [shape: f32[32,32], index: 2, kind: input, shape index: {}]   ;;  %s1477_s3 = inlined_call_operand.vmem [shape: f32[32,1], index: 3, kind: input, shape index: {}]   ;;  %s1478_s4 = inlined_call_operand.vmem [shape: f32[32,32], index: 4, kind: input, shape index: {}]   ;;  %s1479_s5 = inlined_call_operand.vmem [shape: f32[32,1], index: 5, kind: input, shape index: {}]   ;;  %s1480_s6 = inlined_call_operand.hbm [shape: f32[2,32,256], index: 6, kind: output, shape index: {}]  }
   0x1   :  { %1486 = sst [smem:[#allocation12_spill]] %s1474_s0 }
   0x2   :  { %11 = vsyncpa [#allocation3], 0 }
   0x3   :  { %13 = vsyncpa [#allocation3 + $0x1], 0 }
   0x4   :  { %14 = vsyncpa [#allocation6], 0 }
   0x5   :  { %16 = vsyncpa [#allocation6 + $0x1], 0 }
   0x6   :  { %17 = vsyncpa [#allocation4], 0 }
   0x7   :  { %19 = vsyncpa [#allocation4 + $0x1], 0  ;;  %s1148_s21 = smov 0   ;;  %s1150_s22 = smov 0  }
   0x8   :  { %s1152_s23 = smov 0   ;;  %s1154_s24 = smov 0  }
   0x9   :  { %s1156_s25 = smov 0   ;;  %s1158_s26 = smov 0  }
   0xa LB: > { %s803_s27 = sadd.s32 4294967295, %s1102_s26   ;;  %s804_s28 = sadd.s32 4294967294, %s1102_s26   ;;  %s1102_s26 = sphi %s1158_s26, %s25_s26   ;;  %s1098_s25 = sphi %s1156_s25, %s1507_s25   ;;  %s1094_s24 = sphi %s1154_s24, %s1506_s24   ;;  %s1090_s23 = sphi %s1152_s23, %s1505_s23   ;;  %s1086_s22 = sphi %s1150_s22, %s1504_s22   ;;  %s1082_s21 = sphi %s1148_s21, %s1503_s21  }
   0xb   : > { %s37_s29 = sadd.s32 1, %s1098_s25  ;;  %s46_s30 = sadd.s32 1, %s1090_s23 }
   0xc   : > { %p39_p0 = scmp.ge.s32.totalorder %s37_s29, 2  ;;  %p53_p1 = scmp.ne.s32.totalorder %s1090_s23, %s1086_s22 }
   0xd   : > { %p54_p2 = scmp.eq.s32.totalorder %s1102_s26, 0  ;;  %p59_p3 = scmp.ne.s32.totalorder %s1086_s22, %s1082_s21 }
   0xe   : > { %s1509_s29 = smov (%p39_p0, %s37_s29), 0  ;;  %p60_p5 = scmp.eq.s32.totalorder %s803_s27, 0 }
   0xf   : > { %1487 = sst [smem:[#allocation11_spill]] %s1509_s29  ;;  %p1189_p4 = por %p54_p2, %p53_p1 }
  0x10   : > { %s41_s8 = ssub.s32 %s1098_s25, %s1509_s29  ;;  %p197_p6 = scmp.eq.s32.totalorder %s803_s27, 1 }
  0x11   : > { %p44_p7 = scmp.eq.s32.totalorder %s41_s8, 0  ;;  %p1195_p8 = por %p60_p5, %p59_p3 }
  0x12   : > { %p1199_p9 = por %p197_p6, %p53_p1  ;;  %p203_p10 = scmp.eq.s32.totalorder %s804_s28, 1 }
  0x13   : > { %s1489_s9 = scalar_select %p1195_p8, 1, 0 }
  0x14   : > { %s1490_s10 = scalar_select %p1199_p9, 1, 0 }
  0x15   : > { %s1204_s11 = scalar_select %p44_p7, %s1090_s23, %s46_s30  }
  0x16   : > { %p1206_p11 = por %p203_p10, %p59_p3  ;;  %p866_p13 = scmp.lt.s32.totalorder %s1102_s26, 2 }
  0x17   : > { %s1213_s13 = sand.u32 1, %s1090_s23   ;;  %s830_s15 = sshll.u32 %s1098_s25, 10 }
  0x18   : > { %s1491_s12 = scalar_select %p1206_p11, 1, 0 }
  0x19   : > { %s1481_s14 = sshll.u32 %s1213_s13, 6  ;;  %s1492_s0 = sld [smem:[#allocation12_spill]] }
  0x1a   : > { %s239_s19 = scalar_lea.vmem [#allocation2], %s1481_s14  ;;  %p1230_p0 = pnand %p866_p13, %p1189_p4 }
  0x1b   : > { %s248_s20 = sshll.u32 %s239_s19, 4  ;;  %s236_s28 = scalar_lea.sflag [#allocation3], %s1213_s13  ;;  %s1226_s20 = int_to_ptr.vmem [resolvable:$true] %s248_s20 }
  0x1c   : > { %p958_p3 = pneg %p1230_p0 }
  0x1f   : > { %s1222_s18 = scalar_lea.hbm %s1492_s0, %s830_s15  ;;  %s961_s7 = scalar_lea.hbm %s1492_s0, 2048 }
  0x20   : > { %s956_s30 = scalar_lea.hbm %s1222_s18, 1024  ;;  %p962_p4 = scmp.lt.u32.totalorder %s1222_s18, %s1492_s0 }
  0x21   : > { %p957_p2 = scmp.ne.s32.totalorder %s1222_s18, %s956_s30  ;;  %p963_p7 = scmp.lt.u32.totalorder %s961_s7, %s956_s30 }
  0x22   : > { %p965_p13 = scmp.lt.u32.totalorder %s956_s30, %s1222_s18 }
  0x23   : > { %p959_p5 = pnand %p958_p3, %p957_p2  ;;  %p964_p10 = por %p963_p7, %p962_p4 }
  0x25   : > { %p960_p6 = pneg %p959_p5  ;;  %p966_p12 = por %p965_p13, %p964_p10 }
  0x27   : > { %p967_p1 = pnand %p966_p12, %p960_p6 }
  0x29   : > { %970 = shalt.err (!%p967_p1)
}
  0x2a   : > { %s971_s14 = scalar_lea.vmem %s1226_s20, 1024  ;;  %s1104_s8 = smov [#allocation2]  }
  0x2b   : > { %p972_p2 = scmp.ne.s32.totalorder %s1226_s20, %s971_s14  ;;  %s976_s16 = sshll.u32 %s1104_s8, 4  ;;  %s977_s16 = int_to_ptr.vmem [resolvable:$false] %s976_s16 }
  0x2c   : > { %s978_s17 = scalar_lea.vmem %s977_s16, 2048  ;;  %p979_p9 = scmp.lt.s32.totalorder %s1226_s20, %s977_s16 }
  0x2d   : > { %p974_p5 = pnand %p972_p2, %p958_p3  ;;  %p980_p4 = scmp.lt.s32.totalorder %s978_s17, %s971_s14 }
  0x2f   : > { %p975_p11 = pneg %p974_p5  ;;  %p981_p7 = por %p980_p4, %p979_p9 }
  0x31   : > { %p982_p10 = pnand %p981_p7, %p975_p11 }
  0x33   : > { %985 = shalt.err (!%p982_p10)
}
  0x34   : > { %s1484_s30 = smov 256   ;;  %s1106_s7 = smov 16  }
  0x35   : > { %858 = dma.hbm_to_vmem [thread:$0]  (!%p1230_p0), %s1222_s18, 1024, %s1226_s20, %s236_s28, %s1484_s30, %s1484_s30, %s1106_s7  }
  0x36   : > { %p279_p9 = scmp.lt.s32.totalorder %s1102_s26, 3  ;;  %s1272_s8 = scalar_lea.hbm %s1475_s1, %s830_s15 }
  0x37   : > { %p1494_p11 = scmp.ge.s32.totalorder %s1102_s26, 1  ;;  %s1496_s17 = sshll.u32 %s1213_s13, 6 }
  0x38   : > { %s262_s0 = scalar_lea.vmem [#allocation5], %s1496_s17  ;;  %s259_s18 = scalar_lea.sflag [#allocation6], %s1213_s13 }
  0x39   : > { %p1276_p12 = pnand %p1494_p11, %p279_p9  ;;  %s271_s29 = sshll.u32 %s262_s0, 4  ;;  %s1282_s29 = int_to_ptr.vmem [resolvable:$true] %s271_s29 }
  0x3a   : > { %s986_s20 = scalar_lea.hbm %s1272_s8, 1024  ;;  %s991_s14 = scalar_lea.hbm %s1475_s1, 2048 }
  0x3b   : > { %p987_p1 = scmp.ne.s32.totalorder %s1272_s8, %s986_s20  ;;  %p992_p2 = scmp.lt.u32.totalorder %s1272_s8, %s1475_s1 }
  0x3c   : > { %p993_p5 = scmp.lt.u32.totalorder %s991_s14, %s986_s20  ;;  %p995_p7 = scmp.lt.u32.totalorder %s986_s20, %s1272_s8 }
  0x3d   : > { %p989_p6 = pnand %p987_p1, %p958_p3 }
  0x3e   : > { %p994_p4 = por %p993_p5, %p992_p2 }
  0x3f   : > { %p990_p13 = pneg %p989_p6 }
  0x40   : > { %p996_p10 = por %p995_p7, %p994_p4 }
  0x42   : > { %p997_p9 = pnand %p996_p10, %p990_p13 }
  0x44   : > { %1000 = shalt.err (!%p997_p9)
}
  0x45   : > { %s1001_s0 = scalar_lea.vmem %s1282_s29, 1024  ;;  %s1107_s17 = smov [#allocation5]  }
  0x46   : > { %p1002_p11 = scmp.ne.s32.totalorder %s1282_s29, %s1001_s0  ;;  %s1006_s15 = sshll.u32 %s1107_s17, 4  ;;  %s1007_s15 = int_to_ptr.vmem [resolvable:$false] %s1006_s15 }
  0x47   : > { %s1008_s30 = scalar_lea.vmem %s1007_s15, 2048  ;;  %p1009_p8 = scmp.lt.s32.totalorder %s1282_s29, %s1007_s15 }
  0x48   : > { %p1004_p1 = pnand %p1002_p11, %p958_p3  ;;  %p1010_p2 = scmp.lt.s32.totalorder %s1008_s30, %s1001_s0 }
  0x4a   : > { %p1005_p6 = pneg %p1004_p1  ;;  %p1011_p5 = por %p1010_p2, %p1009_p8 }
  0x4c   : > { %p1012_p4 = pnand %p1011_p5, %p1005_p6 }
  0x4e   : > { %1015 = shalt.err (!%p1012_p4)
}
  0x4f   : > { %s1497_s20 = smov 256   ;;  %283 = sbr.rel (%p1276_p12) target bundleno = 609 (0x261), region = 44 }
  0x50   : > { %861 = dma.hbm_to_vmem [thread:$0]  (!%p1230_p0), %s1272_s8, 1024, %s1282_s29, %s259_s18, %s1497_s20, %s1497_s20, %s1106_s7  }
  0x51   : > { %s1316_s28 = sand.u32 (!%p1276_p12), 1, %s1086_s22   ;;  %p1498_p8 = scmp.ne.s32.totalorder (!%p1276_p12), %s1489_s9, 0 }
  0x52   : > { %s1319_s14 = sshll.u32 (!%p1276_p12), %s1316_s28, 6  ;;  %s286_s27 = scalar_lea.sflag (!%p1276_p12), [#allocation3], %s1316_s28 }
  0x53   : > { %s1323_s19 = scalar_lea.vmem (!%p1276_p12), [#allocation2], %s1319_s14 }
  0x56   : > { %1069 = dma.done.wait (%p1498_p8), %s286_s27, 1024  }
  0x57   : > { %1071 = vsyncadd (%p1498_p8), %s286_s27, 4294966272  ;;  %s295_s29 = scalar_lea.sflag [#allocation6], %s1316_s28  ;;  %s298_s13 = scalar_lea.vmem [#allocation5], %s1319_s14 }
  0x58   : > { %1073 = dma.done.wait (%p1498_p8), %s295_s29, 1024  }
  0x59   : > { %1075 = vsyncadd (%p1498_p8), %s295_s29, 4294966272  ;;  %v1108_v0 = vmov 0.0   ;;  %v1109_v1 = vmov 0   ;;  %v336_v2 = vld [vmem:[%s298_s13 + $0x8] sm:$0xff]  ;;  %v338_v3 = vld [vmem:[%s298_s13 + $0x18] sm:$0xff]  ;;  %vm371_vm0 = vcmask 261120  }
  0x5a   : > { %448 = vmatprep.mubr.f32.mxu0 %v1108_v0  ;;  %922 = vset.pattern.permute.xlu0 %v1109_v1  ;;  %v335_v4 = vld [vmem:[%s298_s13] sm:$0xff]  ;;  %v833_v5 = vpack.c.bf16 %v338_v3, %v336_v2  ;;  %v337_v6 = vld [vmem:[%s298_s13 + $0x10] sm:$0xff]  ;;  %v340_v7 = vld [vmem:[%s298_s13 + $0x28] sm:$0xff]  ;;  %s1403_s17 = scalar_lea.vmem [#allocation7], %s1319_s14  ;;  %s832_s14 = sshll.u32 %s1094_s24, 10 }
  0x5b   : > { %923 = vset.pattern.permute.xlu1 %v1109_v1  ;;  %585 = vmatprep.mubr.f32.mxu1 %v1108_v0  ;;  %v342_v8 = vld [vmem:[%s298_s13 + $0x38] sm:$0xff]  ;;  %v835_v9 = vpack.c.bf16 %v337_v6, %v335_v4  ;;  %v339_v11 = vld [vmem:[%s298_s13 + $0x20] sm:$0xff]  ;;  %v341_v12 = vld [vmem:[%s298_s13 + $0x30] sm:$0xff]  ;;  %s690_s15 = sshll.u32 %s1403_s17, 4  ;;  %s1422_s27 = scalar_lea.hbm %s1480_s6, %s832_s14  ;;  %s1424_s15 = int_to_ptr.vmem [resolvable:$true] %s690_s15 }
  0x5c   : > { %v837_v10 = vpack.c.bf16 %v342_v8, %v340_v7  ;;  %834 = vmatprep.subr.bf16.mxu0 %v833_v5  ;;  %v839_v13 = vpack.c.bf16 %v341_v12, %v339_v11  ;;  %v347_v14 = vld [vmem:[%s1477_s3] sm:$0xff]  ;;  %v349_v15 = vld [vmem:[%s1477_s3 + $0x10] sm:$0xff]  ;;  %v348_v16 = vld [vmem:[%s1477_s3 + $0x8] sm:$0xff]  ;;  %s675_s29 = scalar_lea.sflag [#allocation4], %s1316_s28  ;;  %s1016_s13 = scalar_lea.vmem %s1424_s15, 1024 }
  0x5d   : > { %836 = vmatpush1.bf16.msra.mxu0 %v835_v9  ;;  %353 = vperm.xlu0 %922, %v347_v14   ;;  %v350_v17 = vld [vmem:[%s1477_s3 + $0x18] sm:$0xff]  ;;  %v343_v18 = vld [vmem:[%s1476_s2] sm:$0xff]  ;;  %v486_v20 = vld [vmem:[%s1479_s5 + $0x8] sm:$0xff]  ;;  %p1017_p0 = scmp.ne.s32.totalorder %s1424_s15, %s1016_s13  ;;  %p1499_p3 = scmp.ne.s32.totalorder %s1490_s10, 0 }
  0x5e   : > { %838 = vmatprep.subr.bf16.mxu0 %v837_v10  ;;  %363 = vperm.xlu1 %923, %v349_v15   ;;  %v485_v19 = vld [vmem:[%s1479_s5] sm:$0xff]  ;;  %v344_v21 = vld [vmem:[%s1476_s2 + $0x8] sm:$0xff]  ;;  %v487_v22 = vld [vmem:[%s1479_s5 + $0x10] sm:$0xff]  ;;  %s1110_s24 = smov [#allocation7]  }
  0x5f   : > { %v488_v23 = vld [vmem:[%s1479_s5 + $0x18] sm:$0xff]  ;;  %v345_v24 = vld [vmem:[%s1476_s2 + $0x10] sm:$0xff]  ;;  %v481_v58 = vld [vmem:[%s1478_s4] sm:$0xff]  ;;  %p1018_p12 = pnand %p1017_p0, %p1499_p3 }
  0x60   : > { %v346_v25 = vld [vmem:[%s1476_s2 + $0x18] sm:$0xff]  ;;  %v482_v59 = vld [vmem:[%s1478_s4 + $0x8] sm:$0xff]  ;;  %v483_v60 = vld [vmem:[%s1478_s4 + $0x10] sm:$0xff] }
  0x61   : > { %840 = vmatpush1.bf16.msra.mxu0 %v839_v13  ;;  %358 = vperm.xlu0 %922, %v348_v16   ;;  %v484_v61 = vld [vmem:[%s1478_s4 + $0x18] sm:$0xff]  ;;  %p1019_p13 = pneg %p1018_p12 }
  0x62   : > { %368 = vperm.xlu1 %923, %v350_v17  }
  0x64   : > { %817 = vmatmul.mubr.msk.f32.vlgmr.msra.gmra.mrb[0].mxu0 %vm371_vm0, %v343_v18 }
  0x65   : > { %454 = vmatprep.mubr.f32.mxu0 %v1108_v0  ;;  %491 = vperm.xlu0 %922, %v485_v19  }
  0x66   : > { %496 = vperm.xlu1 %923, %v486_v20  }
  0x68   : > { %818 = vmatmul.mubr.msk.f32.gmra.mrb[2].mxu0 %vm371_vm0, %v344_v21 }
  0x69   : > { %460 = vmatprep.mubr.f32.mxu0 %v1108_v0  ;;  %501 = vperm.xlu0 %922, %v487_v22  }
  0x6a   : > { %506 = vperm.xlu1 %923, %v488_v23  }
  0x6c   : > { %819 = vmatmul.mubr.msk.f32.gmra.mrb[4].mxu0 %vm371_vm0, %v345_v24 }
  0x6d   : > { %466 = vmatprep.mubr.f32.mxu0 %v1108_v0 }
  0x70   : > { %820 = vmatmul.mubr.msk.f32.gmra.mrb[6].mxu0 %vm371_vm0, %v346_v25 }
  0xdc   : > { %v354_v26 = vpop.permute.xlu0 %353 }
  0xdd   : > { %v364_v35 = vpop.permute.xlu1 %363 }
  0xe0   : > { %v359_v30 = vpop.permute.xlu0 %358 }
  0xe1   : > { %v369_v46 = vpop.permute.xlu1 %368 }
  0xe4   : > { %v492_v62 = vpop.permute.xlu0 %491 }
  0xe5   : > { %v497_v5 = vpop.permute.xlu1 %496 }
  0xe8   : > { %v502_v13 = vpop.permute.xlu0 %501 }
  0xe9   : > { %v507_v22 = vpop.permute.xlu1 %506 }
 0x137   : > { %v450_v27 = vpop.f32.mrb[0].mxu0 }
 0x138   : > { %v452_v28 = vpop.f32.mrb[1].mxu0  ;;  %v451_v29 = vadd.f32 %v450_v27, %v354_v26 }
 0x139   : > { %v453_v31 = vadd.f32 %v452_v28, %v354_v26 }
 0x13a   : > { %v473_v37 = vmax.f32 %v451_v29, 0.0 }
 0x13b   : > { %v456_v32 = vpop.f32.mrb[2].mxu0  ;;  %v474_v39 = vmax.f32 %v453_v31, 0.0 }
 0x13c   : > { %v457_v33 = vadd.f32 %v456_v32, %v359_v30  ;;  %v458_v34 = vpop.f32.mrb[3].mxu0 }
 0x13d   : > { %v459_v36 = vadd.f32 %v458_v34, %v359_v30 }
 0x13e   : > { %v475_v38 = vmax.f32 %v457_v33, 0.0 }
 0x13f   : > { %v476_v40 = vmax.f32 %v459_v36, 0.0  ;;  %v462_v41 = vpop.f32.mrb[4].mxu0 }
 0x140   : > { %v464_v42 = vpop.f32.mrb[5].mxu0  ;;  %v843_v43 = vpack.c.bf16 %v475_v38, %v473_v37  ;;  %v463_v45 = vadd.f32 %v462_v41, %v364_v35 }
 0x141   : > { %v841_v44 = vpack.c.bf16 %v476_v40, %v474_v39  ;;  %v465_v47 = vadd.f32 %v464_v42, %v364_v35 }
 0x142   : > { %v477_v52 = vmax.f32 %v463_v45, 0.0 }
 0x143   : > { %v468_v48 = vpop.f32.mrb[6].mxu0  ;;  %842 = vmatprep.subr.bf16.mxu1 %v841_v44  ;;  %v478_v54 = vmax.f32 %v465_v47, 0.0 }
 0x144   : > { %v469_v49 = vadd.f32 %v468_v48, %v369_v46  ;;  %v470_v50 = vpop.f32.mrb[7].mxu0  ;;  %844 = vmatpush1.bf16.msra.mxu1 %v843_v43  ;;  %v651_v48 = vld [vmem:[%s1323_s19 + $0x8] sm:$0xff] }
 0x145   : > { %v471_v51 = vadd.f32 %v470_v50, %v369_v46  ;;  %v650_v46 = vld [vmem:[%s1323_s19] sm:$0xff] }
 0x146   : > { %v479_v53 = vmax.f32 %v469_v49, 0.0 }
 0x147   : > { %v480_v55 = vmax.f32 %v471_v51, 0.0 }
 0x148   : > { %v847_v56 = vpack.c.bf16 %v479_v53, %v477_v52 }
 0x149   : > { %v845_v57 = vpack.c.bf16 %v480_v55, %v478_v54  ;;  %v652_v55 = vld [vmem:[%s1323_s19 + $0x10] sm:$0xff] }
 0x14b   : > { %846 = vmatprep.subr.bf16.mxu1 %v845_v57 }
 0x14c   : > { %848 = vmatpush1.bf16.msra.mxu1 %v847_v56  ;;  %v653_v56 = vld [vmem:[%s1323_s19 + $0x18] sm:$0xff] }
 0x14f   : > { %821 = vmatmul.mubr.msk.f32.vlgmr.msra.gmra.mrb[0].mxu1 %vm371_vm0, %v481_v58 }
 0x150   : > { %591 = vmatprep.mubr.f32.mxu1 %v1108_v0 }
 0x153   : > { %822 = vmatmul.mubr.msk.f32.gmra.mrb[2].mxu1 %vm371_vm0, %v482_v59 }
 0x154   : > { %597 = vmatprep.mubr.f32.mxu1 %v1108_v0 }
 0x157   : > { %823 = vmatmul.mubr.msk.f32.gmra.mrb[4].mxu1 %vm371_vm0, %v483_v60 }
 0x158   : > { %603 = vmatprep.mubr.f32.mxu1 %v1108_v0 }
 0x15b   : > { %824 = vmatmul.mubr.msk.f32.gmra.mrb[6].mxu1 %vm371_vm0, %v484_v61 }
 0x222   : > { %v587_v63 = vpop.f32.mrb[0].mxu1 }
 0x223   : > { %v588_v1 = vadd.f32 %v587_v63, %v492_v62  ;;  %v589_v2 = vpop.f32.mrb[1].mxu1  ;;  %v655_v63 = vld [vmem:[%s1323_s19 + $0x28] sm:$0xff] }
 0x224   : > { %v590_v3 = vadd.f32 %v589_v2, %v492_v62  ;;  %v654_v62 = vld [vmem:[%s1323_s19 + $0x20] sm:$0xff] }
 0x225   : > { %v610_v4 = vsub.f32 0.0, %v588_v1 }
 0x226   : > { %v611_v6 = vsub.f32 0.0, %v590_v3  ;;  %v593_v7 = vpop.f32.mrb[2].mxu1 }
 0x227   : > { %v618_v8 = vmul.f32 1.442695, %v610_v4  ;;  %v594_v9 = vadd.f32 %v593_v7, %v497_v5  ;;  %v595_v10 = vpop.f32.mrb[3].mxu1 }
 0x228   : > { %v620_v11 = vmul.f32 1.442695, %v611_v6  ;;  %v596_v0 = vadd.f32 %v595_v10, %v497_v5  ;;  %v656_v5 = vld [vmem:[%s1323_s19 + $0x30] sm:$0xff] }
 0x229   : > { %924 = vpow2.f32 %v618_v8  ;;  %v612_v12 = vsub.f32 0.0, %v594_v9  ;;  %v657_v8 = vld [vmem:[%s1323_s19 + $0x38] sm:$0xff]  ;;  %s1020_s19 = sshll.u32 %s1110_s24, 4  ;;  %s1021_s19 = int_to_ptr.vmem [resolvable:$false] %s1020_s19 }
 0x22a   : > { %926 = vpow2.f32 %v620_v11  ;;  %v613_v14 = vsub.f32 0.0, %v596_v0  ;;  %v599_v15 = vpop.f32.mrb[4].mxu1  ;;  %s1022_s9 = scalar_lea.vmem %s1021_s19, 2048  ;;  %p1023_p7 = scmp.lt.s32.totalorder %s1424_s15, %s1021_s19 }
 0x22b   : > { %v622_v16 = vmul.f32 1.442695, %v612_v12  ;;  %v600_v17 = vadd.f32 %v599_v15, %v502_v13  ;;  %v601_v18 = vpop.f32.mrb[5].mxu1  ;;  %p1024_p10 = scmp.lt.s32.totalorder %s1022_s9, %s1016_s13 }
 0x22c   : > { %v624_v19 = vmul.f32 1.442695, %v613_v14  ;;  %v602_v20 = vadd.f32 %v601_v18, %v502_v13 }
 0x22d   : > { %928 = vpow2.f32 %v622_v16  ;;  %v614_v21 = vsub.f32 0.0, %v600_v17  ;;  %p1025_p9 = por %p1024_p10, %p1023_p7 }
 0x22e   : > { %930 = vpow2.f32 %v624_v19  ;;  %v615_v23 = vsub.f32 0.0, %v602_v20  ;;  %v605_v24 = vpop.f32.mrb[6].mxu1 }
 0x22f   : > { %v626_v25 = vmul.f32 1.442695, %v614_v21  ;;  %v606_v26 = vadd.f32 %v605_v24, %v507_v22  ;;  %v607_v27 = vpop.f32.mrb[7].mxu1  ;;  %p1026_p11 = pnand %p1025_p9, %p1019_p13 }
 0x230   : > { %v628_v28 = vmul.f32 1.442695, %v615_v23  ;;  %v608_v29 = vadd.f32 %v607_v27, %v507_v22 }
 0x231   : > { %932 = vpow2.f32 %v626_v25  ;;  %v616_v30 = vsub.f32 0.0, %v606_v26 }
 0x232   : > { %934 = vpow2.f32 %v628_v28  ;;  %v617_v31 = vsub.f32 0.0, %v608_v29 }
 0x233   : > { %v925_v32 = vpop.eup %924  ;;  %v630_v33 = vmul.f32 1.442695, %v616_v30 }
 0x234   : > { %v927_v34 = vpop.eup %926  ;;  %v634_v35 = vadd.f32 1.0, %v925_v32  ;;  %v632_v36 = vmul.f32 1.442695, %v617_v31 }
 0x235   : > { %v635_v37 = vadd.f32 1.0, %v927_v34  ;;  %936 = vpow2.f32 %v630_v33 }
 0x236   : > { %938 = vrcp.f32 %v634_v35 }
 0x237   : > { %v929_v38 = vpop.eup %928  ;;  %940 = vrcp.f32 %v635_v37 }
 0x238   : > { %v931_v39 = vpop.eup %930  ;;  %v636_v40 = vadd.f32 1.0, %v929_v38  ;;  %942 = vpow2.f32 %v632_v36 }
 0x239   : > { %v637_v41 = vadd.f32 1.0, %v931_v39 }
 0x23a   : > { %944 = vrcp.f32 %v636_v40 }
 0x23b   : > { %v933_v42 = vpop.eup %932  ;;  %946 = vrcp.f32 %v637_v41 }
 0x23c   : > { %v935_v43 = vpop.eup %934  ;;  %v638_v44 = vadd.f32 1.0, %v933_v42 }
 0x23d   : > { %v639_v45 = vadd.f32 1.0, %v935_v43 }
 0x23e   : > { %948 = vrcp.f32 %v638_v44 }
 0x23f   : > { %v937_v47 = vpop.eup %936  ;;  %950 = vrcp.f32 %v639_v45 }
 0x240   : > { %v939_v49 = vpop.eup %938  ;;  %v640_v50 = vadd.f32 1.0, %v937_v47 }
 0x241   : > { %v941_v51 = vpop.eup %940  ;;  %v658_v52 = vmul.f32 %v939_v49, %v650_v46 }
 0x242   : > { %v943_v53 = vpop.eup %942  ;;  %v659_v54 = vmul.f32 %v941_v51, %v651_v48  ;;  %952 = vrcp.f32 %v640_v50 }
 0x243   : > { %666 = vst [vmem:[%s1403_s17] sm:$0xff] %v658_v52  ;;  %v641_v57 = vadd.f32 1.0, %v943_v53 }
 0x244   : > { %v945_v58 = vpop.eup %944  ;;  %667 = vst [vmem:[%s1403_s17 + $0x8] sm:$0xff] %v659_v54 }
 0x245   : > { %v947_v59 = vpop.eup %946  ;;  %v660_v60 = vmul.f32 %v945_v58, %v652_v55  ;;  %954 = vrcp.f32 %v641_v57 }
 0x246   : > { %v661_v61 = vmul.f32 %v947_v59, %v653_v56 }
 0x247   : > { %668 = vst [vmem:[%s1403_s17 + $0x10] sm:$0xff] %v660_v60 }
 0x248   : > { %v949_v1 = vpop.eup %948  ;;  %669 = vst [vmem:[%s1403_s17 + $0x18] sm:$0xff] %v661_v61 }
 0x249   : > { %v951_v2 = vpop.eup %950  ;;  %v662_v3 = vmul.f32 %v949_v1, %v654_v62 }
 0x24a   : > { %v663_v4 = vmul.f32 %v951_v2, %v655_v63 }
 0x24b   : > { %670 = vst [vmem:[%s1403_s17 + $0x20] sm:$0xff] %v662_v3 }
 0x24c   : > { %v953_v6 = vpop.eup %952  ;;  %671 = vst [vmem:[%s1403_s17 + $0x28] sm:$0xff] %v663_v4 }
 0x24d   : > { %v664_v7 = vmul.f32 %v953_v6, %v656_v5 }
 0x24f   : > { %v955_v9 = vpop.eup %954  ;;  %672 = vst [vmem:[%s1403_s17 + $0x30] sm:$0xff] %v664_v7 }
 0x250   : > { %v665_v10 = vmul.f32 %v955_v9, %v657_v8 }
 0x252   : > { %673 = vst [vmem:[%s1403_s17 + $0x38] sm:$0xff] %v665_v10 }
 0x253   : > { %1029 = shalt.err (!%p1026_p11)
}
 0x254   : > { %s1030_s7 = scalar_lea.hbm %s1422_s27, 1024  ;;  %s1034_s18 = scalar_lea.hbm %s1480_s6, 2048 }
 0x255   : > { %p1031_p1 = scmp.ne.s32.totalorder %s1422_s27, %s1030_s7  ;;  %p1035_p5 = scmp.lt.u32.totalorder %s1422_s27, %s1480_s6 }
 0x256   : > { %p1036_p4 = scmp.lt.u32.totalorder %s1034_s18, %s1030_s7  ;;  %p1038_p0 = scmp.lt.u32.totalorder %s1030_s7, %s1422_s27 }
 0x257   : > { %p1032_p6 = pnand %p1031_p1, %p1499_p3 }
 0x258   : > { %p1037_p8 = por %p1036_p4, %p1035_p5 }
 0x259   : > { %p1033_p2 = pneg %p1032_p6 }
 0x25a   : > { %p1039_p12 = por %p1038_p0, %p1037_p8 }
 0x25c   : > { %p1040_p13 = pnand %p1039_p12, %p1033_p2 }
 0x25e   : > { %1043 = shalt.err (!%p1040_p13)
}
 0x25f   : > { %s1111_s14 = smov 256   ;;  %s1112_s30 = smov 16  }
 0x260   : > { %853 = dma.vmem_to_hbm [thread:$0]  (%p1499_p3), %s1424_s15, 1024, %s1422_s27, %s675_s29, %s1111_s14, %s1111_s14, %s1112_s30  }
 0x261 PF: > { %s705_s20 = sand.u32 1, %s1082_s21   ;;  %p1500_p7 = scmp.ne.s32.totalorder %s1491_s12, 0 }
 0x262   : > { %p1501_p10 = scmp.ge.s32.totalorder %s1102_s26, 2  ;;  %s706_s13 = scalar_lea.sflag [#allocation4], %s705_s20 }
 0x264   : > { %p863_p9 = pnand %p1501_p10, %p1500_p7 }
 0x266   : > { %1077 = dma.done.wait (!%p863_p9), %s706_s13, 1024  }
 0x267   : > { %1079 = vsyncadd (!%p863_p9), %s706_s13, 4294966272  ;;  %s25_s26 = sadd.s32 1, %s1102_s26   ;;  %s1502_s10 = sld [smem:[#allocation11_spill]] }
 0x268   : > { %p22_p11 = scmp.ge.s32.totalorder %s25_s26, 4   ;;  %s1503_s21 = smov %s1086_s22 }
 0x269   : > { %s1504_s22 = smov %s1090_s23  ;;  %s1505_s23 = smov %s1204_s11 }
 0x26a   : > { %s1506_s24 = smov %s1098_s25  ;;  %24 = sbr.rel (!%p22_p11) target bundleno = 10 (0xa), region = 102 }
 0x26d   : > { %s1507_s25 = smov %s1502_s10 }
 0x271   :  { %711 = vsyncpa [#allocation3], 1 }
 0x272   :  { %713 = vsyncpa [#allocation3 + $0x1], 1 }
 0x273   :  { %714 = vsyncpa [#allocation6], 1 }
 0x274   :  { %716 = vsyncpa [#allocation6 + $0x1], 1 }
 0x275   :  { %717 = vsyncpa [#allocation4], 1 }
 0x276   :  { %719 = vsyncpa [#allocation4 + $0x1], 1 }

</bundles_post_ra>
